<compile_context>
chip_gen: v6e
topology: v6e:2x2x1
jax: 0.10.0
libtpu: 0.0.40
codegen_flags: <defaults>
</compile_context>

<pallas_src>
import functools
import math

import numpy as np
import jax
import jax.numpy as jnp
from jax import lax
from jax.experimental import pallas as pl
from jax.experimental.pallas import tpu as pltpu


# ----------------------------- constants / helpers -----------------------------

def _pair_rotation_matrix(n: int) -> np.ndarray:
    """Block-diagonal J with 2x2 blocks [[0,1],[-1,0]] so that
    (t @ J)[..., 2i] = -t[..., 2i+1] and (t @ J)[..., 2i+1] = t[..., 2i]."""
    j2 = np.array([[0.0, 1.0], [-1.0, 0.0]], dtype=np.float32)
    return np.kron(np.eye(n // 2, dtype=np.float32), j2)


# ----------------------------- fused Pallas kernel -----------------------------

def _fused_attn_kernel(x_ref, mask_ref, qcos_ref, qsin_ref, kcos_ref, ksin_ref,
                       jq_ref, jk_ref, wqkv_ref, wo_ref, o_ref,
                       *, n_heads, n_rep, head_dim, scale):
    f32 = jnp.float32
    HD = n_heads * head_dim
    KD = (n_heads // n_rep) * head_dim

    x = x_ref[0].astype(f32)                                        # (S, dim)

    # Fused QKV projection: one lane-dense (S, dim) @ (dim, HD+2*KD) matmul.
    qkv = jnp.dot(x, wqkv_ref[...], preferred_element_type=f32)     # (S, HD+2*KD)
    q = qkv[:, :HD]                                                 # (S, HD)
    k = qkv[:, HD:HD + KD]                                          # (S, KD)
    v = qkv[:, HD + KD:]                                            # (S, KD)

    # Interleaved complex RoPE:  out = t * cos_exp + (t @ J) * sin_exp
    # (cos/sin expanded per pair & tiled per head in the wrapper; J swaps each pair w/ sign).
    q = q * qcos_ref[...] + jnp.dot(q, jq_ref[...], preferred_element_type=f32) * qsin_ref[...]
    k = k * kcos_ref[...] + jnp.dot(k, jk_ref[...], preferred_element_type=f32) * ksin_ref[...]

    # Key-padding bias: mask is 1.0 (valid) / 0.0 (pad) -> 0 / -1e30, broadcast over queries.
    bias = (mask_ref[0] - 1.0) * 1e30                               # (1, S)

    outs = []
    for h in range(n_heads):                                        # static unroll (H=4)
        kv = h // n_rep                                             # GQA: shared KV head
        qh = q[:, h * head_dim:(h + 1) * head_dim]                  # (S, D)
        kh = k[:, kv * head_dim:(kv + 1) * head_dim]                # (S, D)
        vh = v[:, kv * head_dim:(kv + 1) * head_dim]                # (S, D)

        # scores = qh @ kh^T without an explicit transpose.
        s = lax.dot_general(qh, kh, (((1,), (1,)), ((), ())),
                            preferred_element_type=f32) * scale     # (S, S)
        s = s + bias
        m = jnp.max(s, axis=-1, keepdims=True)
        p = jnp.exp(s - m)
        l = jnp.sum(p, axis=-1, keepdims=True)
        p = p * pl.reciprocal(l, approx=False)                      # exact; keeps 1e-4 tol
        outs.append(jnp.dot(p, vh, preferred_element_type=f32))     # (S, D)

    attn = jnp.concatenate(outs, axis=-1)                           # (S, HD)
    out = jnp.dot(attn, wo_ref[...], preferred_element_type=f32)    # (S, dim)
    o_ref[0] = out.astype(o_ref.dtype)


def attention_forward(params, x, x_mask, cos, sin, *, n_heads, n_kv_heads):
    B, S, dim = x.shape
    head_dim = dim // n_heads
    n_rep = n_heads // n_kv_heads
    HD = n_heads * head_dim
    KD = n_kv_heads * head_dim
    scale = 1.0 / math.sqrt(head_dim)

    Wq, Wk, Wv, Wo = params["wq"], params["wk"], params["wv"], params["wo"]

    # One-time weight / table prep (constants & weights only -- no per-token activation work).
    wqkv = jnp.concatenate([Wq.T, Wk.T, Wv.T], axis=1)              # (dim, HD+2*KD) = (64, 128)
    wo_t = Wo.T                                                     # (HD, dim)
    cos2 = jnp.repeat(cos, 2, axis=-1)                              # (S, head_dim)
    sin2 = jnp.repeat(sin, 2, axis=-1)
    qcos, qsin = jnp.tile(cos2, (1, n_heads)), jnp.tile(sin2, (1, n_heads))        # (S, HD)
    kcos, ksin = jnp.tile(cos2, (1, n_kv_heads)), jnp.tile(sin2, (1, n_kv_heads))  # (S, KD)
    jq = jnp.asarray(_pair_rotation_matrix(HD))                     # (HD, HD), static constant
    jk = jnp.asarray(_pair_rotation_matrix(KD))                     # (KD, KD), static constant
    maskf = x_mask.astype(jnp.float32).reshape(B, 1, S)             # 1.0 valid / 0.0 pad

    kern = functools.partial(_fused_attn_kernel, n_heads=n_heads, n_rep=n_rep,
                             head_dim=head_dim, scale=scale)

    return pl.pallas_call(
        kern,
        out_shape=jax.ShapeDtypeStruct((B, S, dim), x.dtype),
        grid=(B,),
        in_specs=[
            pl.BlockSpec((1, S, dim), lambda b: (b, 0, 0)),         # x
            pl.BlockSpec((1, 1, S), lambda b: (b, 0, 0)),           # key-padding mask (float)
            pl.BlockSpec((S, HD), lambda b: (0, 0)),                # qcos
            pl.BlockSpec((S, HD), lambda b: (0, 0)),                # qsin
            pl.BlockSpec((S, KD), lambda b: (0, 0)),                # kcos
            pl.BlockSpec((S, KD), lambda b: (0, 0)),                # ksin
            pl.BlockSpec((HD, HD), lambda b: (0, 0)),               # J (query heads)
            pl.BlockSpec((KD, KD), lambda b: (0, 0)),               # J (kv heads)
            pl.BlockSpec((dim, HD + 2 * KD), lambda b: (0, 0)),     # fused Wqkv (lane-dense)
            pl.BlockSpec((HD, dim), lambda b: (0, 0)),              # Wo^T
        ],
        out_specs=pl.BlockSpec((1, S, dim), lambda b: (b, 0, 0)),
        compiler_params=pltpu.CompilerParams(
            dimension_semantics=("parallel",)),                     # batch shards across TCs (v7x)
    )(x, maskf, qcos, qsin, kcos, ksin, jq, jk, wqkv, wo_t)


# TODO(synk): the sparse top-k attention "dropout" branch (topk_attn), the flash_attn/sage
# varlen unpad path, and the y_dim>0 cross-attention branch are not exercised in this config
# (dropout=False, fp32 -> SDPA path, y_dim=0) and are not implemented.
# TODO(synk): for realistic sequence lengths the whole-S block would need flash-style KV tiling
# (budget against v7x's 64 MiB VMEM); at S=16 a single dense block is optimal.


# ----------------------------- pure-JAX reference -----------------------------

def reference_forward(params, x, x_mask, cos, sin, *, n_heads, n_kv_heads):
    B, S, dim = x.shape
    head_dim = dim // n_heads
    Wq, Wk, Wv, Wo = params["wq"], params["wk"], params["wv"], params["wo"]

    xq = (x @ Wq.T).reshape(B, S, n_heads, head_dim)
    xk = (x @ Wk.T).reshape(B, S, n_kv_heads, head_dim)
    xv = (x @ Wv.T).reshape(B, S, n_kv_heads, head_dim)
    n_rep = n_heads // n_kv_heads
    xk = jnp.repeat(xk, n_rep, axis=2)
    xv = jnp.repeat(xv, n_rep, axis=2)

    def rope(t):  # interleaved complex RoPE, as in the torch view_as_complex impl
        tr, ti = t[..., 0::2], t[..., 1::2]
        c = cos[None, :, None, :]
        s = sin[None, :, None, :]
        out = jnp.stack([tr * c - ti * s, tr * s + ti * c], axis=-1)
        return out.reshape(t.shape)

    xq, xk = rope(xq), rope(xk)
    q = jnp.transpose(xq, (0, 2, 1, 3))
    k = jnp.transpose(xk, (0, 2, 1, 3))
    v = jnp.transpose(xv, (0, 2, 1, 3))

    scale = 1.0 / math.sqrt(head_dim)
    scores = jnp.einsum("bhqd,bhkd->bhqk", q, k) * scale
    scores = scores + jnp.where(x_mask, 0.0, -1e30)[:, None, None, :]
    probs = jax.nn.softmax(scores, axis=-1)
    out = jnp.einsum("bhqk,bhkd->bhqd", probs, v)
    out = jnp.transpose(out, (0, 2, 1, 3)).reshape(B, S, n_heads * head_dim)
    return out @ Wo.T


# ----------------------------- main -----------------------------

if __name__ == "__main__":
    B, S, dim = 2, 16, 64
    n_heads, n_kv_heads = 4, 2
    head_dim = dim // n_heads

    key = jax.random.PRNGKey(0)
    kx, kq, kk, kv, ko = jax.random.split(key, 5)

    def linear_init(k, out_f, in_f):
        bound = 1.0 / math.sqrt(in_f)
        return jax.random.uniform(k, (out_f, in_f), jnp.float32, -bound, bound)

    params = {
        "wq": linear_init(kq, n_heads * head_dim, dim),
        "wk": linear_init(kk, n_kv_heads * head_dim, dim),
        "wv": linear_init(kv, n_kv_heads * head_dim, dim),
        "wo": linear_init(ko, dim, n_heads * head_dim),
    }

    x = jax.random.normal(kx, (B, S, dim), jnp.float32)

    # key-padding mask: batch 0 fully valid, batch 1 has last 4 tokens padded
    x_mask = jnp.ones((B, S), dtype=bool)
    x_mask = x_mask.at[1, S - 4:].set(False)

    # freqs_cis (interleaved complex RoPE) as cos/sin of shape (S, head_dim//2)
    inv_freq = 1.0 / (10000.0 ** (jnp.arange(0, head_dim, 2, dtype=jnp.float32) / head_dim))
    angles = jnp.arange(S, dtype=jnp.float32)[:, None] * inv_freq[None, :]
    cos, sin = jnp.cos(angles), jnp.sin(angles)

    fwd = jax.jit(functools.partial(attention_forward,
                                    n_heads=n_heads, n_kv_heads=n_kv_heads))
    out = jax.block_until_ready(fwd(params, x, x_mask, cos, sin))

    ref = reference_forward(params, x, x_mask, cos, sin,
                            n_heads=n_heads, n_kv_heads=n_kv_heads)
    assert out.shape == (B, S, dim) and out.dtype == jnp.float32
    assert jnp.allclose(out, ref, atol=1e-4, rtol=1e-4), float(jnp.max(jnp.abs(out - ref)))

    print("KERNEL_OK")
</pallas_src>

<mosaic_0001>
module attributes {stable_mosaic.version = 11 : i64} {
  func.func @_fused_attn_kernel(%arg0: i32, %arg1: memref<1x16x64xf32, #tpu.memory_space<vmem>>, %arg2: memref<1x1x16xf32, #tpu.memory_space<vmem>>, %arg3: memref<16x64xf32, #tpu.memory_space<vmem>>, %arg4: memref<16x64xf32, #tpu.memory_space<vmem>>, %arg5: memref<16x32xf32, #tpu.memory_space<vmem>>, %arg6: memref<16x32xf32, #tpu.memory_space<vmem>>, %arg7: memref<64x64xf32, #tpu.memory_space<vmem>>, %arg8: memref<32x32xf32, #tpu.memory_space<vmem>>, %arg9: memref<64x128xf32, #tpu.memory_space<vmem>>, %arg10: memref<64x64xf32, #tpu.memory_space<vmem>>, %arg11: memref<1x16x64xf32, #tpu.memory_space<vmem>>) attributes {dimension_semantics = [#tpu.dimension_semantics<parallel>], iteration_bounds = array<i64: 2>, scalar_prefetch = 0 : i64, scratch_operands = 0 : i64, tpu.core_type = #tpu.core_type<tc>, window_params = [{transform_indices = @transform_0, window_bounds = array<i64: 1, 16, 64>}, {transform_indices = @transform_1, window_bounds = array<i64: 1, 1, 16>}, {pipeline_mode = #tpu.pipeline_mode<synchronous>, transform_indices = @transform_2, window_bounds = array<i64: 16, 64>}, {pipeline_mode = #tpu.pipeline_mode<synchronous>, transform_indices = @transform_3, window_bounds = array<i64: 16, 64>}, {pipeline_mode = #tpu.pipeline_mode<synchronous>, transform_indices = @transform_4, window_bounds = array<i64: 16, 32>}, {pipeline_mode = #tpu.pipeline_mode<synchronous>, transform_indices = @transform_5, window_bounds = array<i64: 16, 32>}, {pipeline_mode = #tpu.pipeline_mode<synchronous>, transform_indices = @transform_6, window_bounds = array<i64: 64, 64>}, {pipeline_mode = #tpu.pipeline_mode<synchronous>, transform_indices = @transform_7, window_bounds = array<i64: 32, 32>}, {pipeline_mode = #tpu.pipeline_mode<synchronous>, transform_indices = @transform_8, window_bounds = array<i64: 64, 128>}, {pipeline_mode = #tpu.pipeline_mode<synchronous>, transform_indices = @transform_9, window_bounds = array<i64: 64, 64>}, {transform_indices = @transform_10, window_bounds = array<i64: 1, 16, 64>}]} {
    %c0 = arith.constant 0 : index
    %c0_0 = arith.constant 0 : index
    %c0_1 = arith.constant 0 : index
    %0 = vector.load %arg1[%c0, %c0_0, %c0_1] : memref<1x16x64xf32, #tpu.memory_space<vmem>>, vector<1x16x64xf32>
    %1 = vector.shape_cast %0 : vector<1x16x64xf32> to vector<16x64xf32>
    %c0_2 = arith.constant 0 : index
    %c0_3 = arith.constant 0 : index
    %2 = vector.load %arg9[%c0_2, %c0_3] : memref<64x128xf32, #tpu.memory_space<vmem>>, vector<64x128xf32>
    %cst = arith.constant dense<0.000000e+00> : vector<16x128xf32>
    %3 = tpu.matmul %1, %2, %cst {dimension_numbers = #tpu.dot_dimension_numbers<[1], [0], [0], [1], [0, 0, 1, 1], [], []>} : vector<16x64xf32>, vector<64x128xf32>, vector<16x128xf32> -> vector<16x128xf32>
    %4 = vector.extract_strided_slice %3 {offsets = [0, 0], sizes = [16, 64], strides = [1, 1]} : vector<16x128xf32> to vector<16x64xf32>
    %5 = vector.extract_strided_slice %3 {offsets = [0, 64], sizes = [16, 32], strides = [1, 1]} : vector<16x128xf32> to vector<16x32xf32>
    %6 = vector.extract_strided_slice %3 {offsets = [0, 96], sizes = [16, 32], strides = [1, 1]} : vector<16x128xf32> to vector<16x32xf32>
    %c0_4 = arith.constant 0 : index
    %c0_5 = arith.constant 0 : index
    %7 = vector.load %arg3[%c0_4, %c0_5] : memref<16x64xf32, #tpu.memory_space<vmem>>, vector<16x64xf32>
    %8 = arith.mulf %4, %7 : vector<16x64xf32>
    %c0_6 = arith.constant 0 : index
    %c0_7 = arith.constant 0 : index
    %9 = vector.load %arg7[%c0_6, %c0_7] : memref<64x64xf32, #tpu.memory_space<vmem>>, vector<64x64xf32>
    %cst_8 = arith.constant dense<0.000000e+00> : vector<16x64xf32>
    %10 = tpu.matmul %4, %9, %cst_8 {dimension_numbers = #tpu.dot_dimension_numbers<[1], [0], [0], [1], [0, 0, 1, 1], [], []>} : vector<16x64xf32>, vector<64x64xf32>, vector<16x64xf32> -> vector<16x64xf32>
    %c0_9 = arith.constant 0 : index
    %c0_10 = arith.constant 0 : index
    %11 = vector.load %arg4[%c0_9, %c0_10] : memref<16x64xf32, #tpu.memory_space<vmem>>, vector<16x64xf32>
    %12 = arith.mulf %10, %11 : vector<16x64xf32>
    %13 = arith.addf %8, %12 : vector<16x64xf32>
    %c0_11 = arith.constant 0 : index
    %c0_12 = arith.constant 0 : index
    %14 = vector.load %arg5[%c0_11, %c0_12] : memref<16x32xf32, #tpu.memory_space<vmem>>, vector<16x32xf32>
    %15 = arith.mulf %5, %14 : vector<16x32xf32>
    %c0_13 = arith.constant 0 : index
    %c0_14 = arith.constant 0 : index
    %16 = vector.load %arg8[%c0_13, %c0_14] : memref<32x32xf32, #tpu.memory_space<vmem>>, vector<32x32xf32>
    %cst_15 = arith.constant dense<0.000000e+00> : vector<16x32xf32>
    %17 = tpu.matmul %5, %16, %cst_15 {dimension_numbers = #tpu.dot_dimension_numbers<[1], [0], [0], [1], [0, 0, 1, 1], [], []>} : vector<16x32xf32>, vector<32x32xf32>, vector<16x32xf32> -> vector<16x32xf32>
    %c0_16 = arith.constant 0 : index
    %c0_17 = arith.constant 0 : index
    %18 = vector.load %arg6[%c0_16, %c0_17] : memref<16x32xf32, #tpu.memory_space<vmem>>, vector<16x32xf32>
    %19 = arith.mulf %17, %18 : vector<16x32xf32>
    %20 = arith.addf %15, %19 : vector<16x32xf32>
    %c0_18 = arith.constant 0 : index
    %c0_19 = arith.constant 0 : index
    %c0_20 = arith.constant 0 : index
    %21 = vector.load %arg2[%c0_18, %c0_19, %c0_20] : memref<1x1x16xf32, #tpu.memory_space<vmem>>, vector<1x1x16xf32>
    %22 = vector.shape_cast %21 : vector<1x1x16xf32> to vector<1x16xf32>
    %cst_21 = arith.constant 1.000000e+00 : f32
    %23 = vector.broadcast %cst_21 : f32 to vector<1x16xf32>
    %24 = arith.subf %22, %23 : vector<1x16xf32>
    %cst_22 = arith.constant 1.000000e+30 : f32
    %25 = vector.broadcast %cst_22 : f32 to vector<1x16xf32>
    %26 = arith.mulf %24, %25 : vector<1x16xf32>
    %27 = vector.extract_strided_slice %13 {offsets = [0, 0], sizes = [16, 16], strides = [1, 1]} : vector<16x64xf32> to vector<16x16xf32>
    %28 = vector.extract_strided_slice %20 {offsets = [0, 0], sizes = [16, 16], strides = [1, 1]} : vector<16x32xf32> to vector<16x16xf32>
    %29 = vector.extract_strided_slice %6 {offsets = [0, 0], sizes = [16, 16], strides = [1, 1]} : vector<16x32xf32> to vector<16x16xf32>
    %cst_23 = arith.constant dense<0.000000e+00> : vector<16x16xf32>
    %30 = tpu.matmul %27, %28, %cst_23 {dimension_numbers = #tpu.dot_dimension_numbers<[1], [1], [0], [0], [0, 0, 1, 0], [], []>} : vector<16x16xf32>, vector<16x16xf32>, vector<16x16xf32> -> vector<16x16xf32>
    %cst_24 = arith.constant 2.500000e-01 : f32
    %31 = vector.broadcast %cst_24 : f32 to vector<16x16xf32>
    %32 = arith.mulf %30, %31 : vector<16x16xf32>
    %33 = vector.broadcast %26 : vector<1x16xf32> to vector<16x16xf32>
    %34 = arith.addf %32, %33 : vector<16x16xf32>
    %cst_25 = arith.constant dense<0xFF800000> : vector<16xf32>
    %35 = vector.multi_reduction <maximumf>, %34, %cst_25 [1] : vector<16x16xf32> to vector<16xf32>
    %36 = vector.shape_cast %35 : vector<16xf32> to vector<16x1xf32>
    %37 = vector.broadcast %36 : vector<16x1xf32> to vector<16x16xf32>
    %38 = arith.subf %34, %37 : vector<16x16xf32>
    %39 = math.exp %38 : vector<16x16xf32>
    %cst_26 = arith.constant dense<0.000000e+00> : vector<16xf32>
    %40 = vector.multi_reduction <add>, %39, %cst_26 [1] : vector<16x16xf32> to vector<16xf32>
    %41 = vector.shape_cast %40 : vector<16xf32> to vector<16x1xf32>
    %42 = tpu.reciprocal %41 : vector<16x1xf32> -> vector<16x1xf32>
    %43 = vector.broadcast %42 : vector<16x1xf32> to vector<16x16xf32>
    %44 = arith.mulf %39, %43 : vector<16x16xf32>
    %cst_27 = arith.constant dense<0.000000e+00> : vector<16x16xf32>
    %45 = tpu.matmul %44, %29, %cst_27 {dimension_numbers = #tpu.dot_dimension_numbers<[1], [0], [0], [1], [0, 0, 1, 1], [], []>} : vector<16x16xf32>, vector<16x16xf32>, vector<16x16xf32> -> vector<16x16xf32>
    %46 = vector.extract_strided_slice %13 {offsets = [0, 16], sizes = [16, 16], strides = [1, 1]} : vector<16x64xf32> to vector<16x16xf32>
    %47 = vector.extract_strided_slice %20 {offsets = [0, 0], sizes = [16, 16], strides = [1, 1]} : vector<16x32xf32> to vector<16x16xf32>
    %48 = vector.extract_strided_slice %6 {offsets = [0, 0], sizes = [16, 16], strides = [1, 1]} : vector<16x32xf32> to vector<16x16xf32>
    %cst_28 = arith.constant dense<0.000000e+00> : vector<16x16xf32>
    %49 = tpu.matmul %46, %47, %cst_28 {dimension_numbers = #tpu.dot_dimension_numbers<[1], [1], [0], [0], [0, 0, 1, 0], [], []>} : vector<16x16xf32>, vector<16x16xf32>, vector<16x16xf32> -> vector<16x16xf32>
    %cst_29 = arith.constant 2.500000e-01 : f32
    %50 = vector.broadcast %cst_29 : f32 to vector<16x16xf32>
    %51 = arith.mulf %49, %50 : vector<16x16xf32>
    %52 = vector.broadcast %26 : vector<1x16xf32> to vector<16x16xf32>
    %53 = arith.addf %51, %52 : vector<16x16xf32>
    %cst_30 = arith.constant dense<0xFF800000> : vector<16xf32>
    %54 = vector.multi_reduction <maximumf>, %53, %cst_30 [1] : vector<16x16xf32> to vector<16xf32>
    %55 = vector.shape_cast %54 : vector<16xf32> to vector<16x1xf32>
    %56 = vector.broadcast %55 : vector<16x1xf32> to vector<16x16xf32>
    %57 = arith.subf %53, %56 : vector<16x16xf32>
    %58 = math.exp %57 : vector<16x16xf32>
    %cst_31 = arith.constant dense<0.000000e+00> : vector<16xf32>
    %59 = vector.multi_reduction <add>, %58, %cst_31 [1] : vector<16x16xf32> to vector<16xf32>
    %60 = vector.shape_cast %59 : vector<16xf32> to vector<16x1xf32>
    %61 = tpu.reciprocal %60 : vector<16x1xf32> -> vector<16x1xf32>
    %62 = vector.broadcast %61 : vector<16x1xf32> to vector<16x16xf32>
    %63 = arith.mulf %58, %62 : vector<16x16xf32>
    %cst_32 = arith.constant dense<0.000000e+00> : vector<16x16xf32>
    %64 = tpu.matmul %63, %48, %cst_32 {dimension_numbers = #tpu.dot_dimension_numbers<[1], [0], [0], [1], [0, 0, 1, 1], [], []>} : vector<16x16xf32>, vector<16x16xf32>, vector<16x16xf32> -> vector<16x16xf32>
    %65 = vector.extract_strided_slice %13 {offsets = [0, 32], sizes = [16, 16], strides = [1, 1]} : vector<16x64xf32> to vector<16x16xf32>
    %66 = vector.extract_strided_slice %20 {offsets = [0, 16], sizes = [16, 16], strides = [1, 1]} : vector<16x32xf32> to vector<16x16xf32>
    %67 = vector.extract_strided_slice %6 {offsets = [0, 16], sizes = [16, 16], strides = [1, 1]} : vector<16x32xf32> to vector<16x16xf32>
    %cst_33 = arith.constant dense<0.000000e+00> : vector<16x16xf32>
    %68 = tpu.matmul %65, %66, %cst_33 {dimension_numbers = #tpu.dot_dimension_numbers<[1], [1], [0], [0], [0, 0, 1, 0], [], []>} : vector<16x16xf32>, vector<16x16xf32>, vector<16x16xf32> -> vector<16x16xf32>
    %cst_34 = arith.constant 2.500000e-01 : f32
    %69 = vector.broadcast %cst_34 : f32 to vector<16x16xf32>
    %70 = arith.mulf %68, %69 : vector<16x16xf32>
    %71 = vector.broadcast %26 : vector<1x16xf32> to vector<16x16xf32>
    %72 = arith.addf %70, %71 : vector<16x16xf32>
    %cst_35 = arith.constant dense<0xFF800000> : vector<16xf32>
    %73 = vector.multi_reduction <maximumf>, %72, %cst_35 [1] : vector<16x16xf32> to vector<16xf32>
    %74 = vector.shape_cast %73 : vector<16xf32> to vector<16x1xf32>
    %75 = vector.broadcast %74 : vector<16x1xf32> to vector<16x16xf32>
    %76 = arith.subf %72, %75 : vector<16x16xf32>
    %77 = math.exp %76 : vector<16x16xf32>
    %cst_36 = arith.constant dense<0.000000e+00> : vector<16xf32>
    %78 = vector.multi_reduction <add>, %77, %cst_36 [1] : vector<16x16xf32> to vector<16xf32>
    %79 = vector.shape_cast %78 : vector<16xf32> to vector<16x1xf32>
    %80 = tpu.reciprocal %79 : vector<16x1xf32> -> vector<16x1xf32>
    %81 = vector.broadcast %80 : vector<16x1xf32> to vector<16x16xf32>
    %82 = arith.mulf %77, %81 : vector<16x16xf32>
    %cst_37 = arith.constant dense<0.000000e+00> : vector<16x16xf32>
    %83 = tpu.matmul %82, %67, %cst_37 {dimension_numbers = #tpu.dot_dimension_numbers<[1], [0], [0], [1], [0, 0, 1, 1], [], []>} : vector<16x16xf32>, vector<16x16xf32>, vector<16x16xf32> -> vector<16x16xf32>
    %84 = vector.extract_strided_slice %13 {offsets = [0, 48], sizes = [16, 16], strides = [1, 1]} : vector<16x64xf32> to vector<16x16xf32>
    %85 = vector.extract_strided_slice %20 {offsets = [0, 16], sizes = [16, 16], strides = [1, 1]} : vector<16x32xf32> to vector<16x16xf32>
    %86 = vector.extract_strided_slice %6 {offsets = [0, 16], sizes = [16, 16], strides = [1, 1]} : vector<16x32xf32> to vector<16x16xf32>
    %cst_38 = arith.constant dense<0.000000e+00> : vector<16x16xf32>
    %87 = tpu.matmul %84, %85, %cst_38 {dimension_numbers = #tpu.dot_dimension_numbers<[1], [1], [0], [0], [0, 0, 1, 0], [], []>} : vector<16x16xf32>, vector<16x16xf32>, vector<16x16xf32> -> vector<16x16xf32>
    %cst_39 = arith.constant 2.500000e-01 : f32
    %88 = vector.broadcast %cst_39 : f32 to vector<16x16xf32>
    %89 = arith.mulf %87, %88 : vector<16x16xf32>
    %90 = vector.broadcast %26 : vector<1x16xf32> to vector<16x16xf32>
    %91 = arith.addf %89, %90 : vector<16x16xf32>
    %cst_40 = arith.constant dense<0xFF800000> : vector<16xf32>
    %92 = vector.multi_reduction <maximumf>, %91, %cst_40 [1] : vector<16x16xf32> to vector<16xf32>
    %93 = vector.shape_cast %92 : vector<16xf32> to vector<16x1xf32>
    %94 = vector.broadcast %93 : vector<16x1xf32> to vector<16x16xf32>
    %95 = arith.subf %91, %94 : vector<16x16xf32>
    %96 = math.exp %95 : vector<16x16xf32>
    %cst_41 = arith.constant dense<0.000000e+00> : vector<16xf32>
    %97 = vector.multi_reduction <add>, %96, %cst_41 [1] : vector<16x16xf32> to vector<16xf32>
    %98 = vector.shape_cast %97 : vector<16xf32> to vector<16x1xf32>
    %99 = tpu.reciprocal %98 : vector<16x1xf32> -> vector<16x1xf32>
    %100 = vector.broadcast %99 : vector<16x1xf32> to vector<16x16xf32>
    %101 = arith.mulf %96, %100 : vector<16x16xf32>
    %cst_42 = arith.constant dense<0.000000e+00> : vector<16x16xf32>
    %102 = tpu.matmul %101, %86, %cst_42 {dimension_numbers = #tpu.dot_dimension_numbers<[1], [0], [0], [1], [0, 0, 1, 1], [], []>} : vector<16x16xf32>, vector<16x16xf32>, vector<16x16xf32> -> vector<16x16xf32>
    %103 = tpu.concatenate %45, %64, %83, %102 in 1 : vector<16x16xf32>, vector<16x16xf32>, vector<16x16xf32>, vector<16x16xf32> -> vector<16x64xf32>
    %c0_43 = arith.constant 0 : index
    %c0_44 = arith.constant 0 : index
    %104 = vector.load %arg10[%c0_43, %c0_44] : memref<64x64xf32, #tpu.memory_space<vmem>>, vector<64x64xf32>
    %cst_45 = arith.constant dense<0.000000e+00> : vector<16x64xf32>
    %105 = tpu.matmul %103, %104, %cst_45 {dimension_numbers = #tpu.dot_dimension_numbers<[1], [0], [0], [1], [0, 0, 1, 1], [], []>} : vector<16x64xf32>, vector<64x64xf32>, vector<16x64xf32> -> vector<16x64xf32>
    %c0_46 = arith.constant 0 : index
    %c0_47 = arith.constant 0 : index
    %c0_48 = arith.constant 0 : index
    %106 = vector.load %arg11[%c0_46, %c0_47, %c0_48] : memref<1x16x64xf32, #tpu.memory_space<vmem>>, vector<1x16x64xf32>
    %107 = vector.shape_cast %106 : vector<1x16x64xf32> to vector<16x64xf32>
    %108 = vector.shape_cast %105 : vector<16x64xf32> to vector<1x16x64xf32>
    tpu.vector_store %arg11[%c0_46, %c0_47, %c0_48], %108 {strides = array<i32>} : memref<1x16x64xf32, #tpu.memory_space<vmem>>, vector<1x16x64xf32>,
    return
  }
  func.func @transform_0(%arg0: i32) -> (i32, i32, i32) {
    %c0_i32 = arith.constant 0 : i32
    %c0_i32_0 = arith.constant 0 : i32
    %c0_i32_1 = arith.constant 0 : i32
    return %arg0, %c0_i32, %c0_i32_0 : i32, i32, i32
  }
  func.func @transform_1(%arg0: i32) -> (i32, i32, i32) {
    %c0_i32 = arith.constant 0 : i32
    %c0_i32_0 = arith.constant 0 : i32
    %c0_i32_1 = arith.constant 0 : i32
    return %arg0, %c0_i32, %c0_i32_0 : i32, i32, i32
  }
  func.func @transform_2(%arg0: i32) -> (i32, i32) {
    %c0_i32 = arith.constant 0 : i32
    %c0_i32_0 = arith.constant 0 : i32
    %c0_i32_1 = arith.constant 0 : i32
    return %c0_i32, %c0_i32_0 : i32, i32
  }
  func.func @transform_3(%arg0: i32) -> (i32, i32) {
    %c0_i32 = arith.constant 0 : i32
    %c0_i32_0 = arith.constant 0 : i32
    %c0_i32_1 = arith.constant 0 : i32
    return %c0_i32, %c0_i32_0 : i32, i32
  }
  func.func @transform_4(%arg0: i32) -> (i32, i32) {
    %c0_i32 = arith.constant 0 : i32
    %c0_i32_0 = arith.constant 0 : i32
    %c0_i32_1 = arith.constant 0 : i32
    return %c0_i32, %c0_i32_0 : i32, i32
  }
  func.func @transform_5(%arg0: i32) -> (i32, i32) {
    %c0_i32 = arith.constant 0 : i32
    %c0_i32_0 = arith.constant 0 : i32
    %c0_i32_1 = arith.constant 0 : i32
    return %c0_i32, %c0_i32_0 : i32, i32
  }
  func.func @transform_6(%arg0: i32) -> (i32, i32) {
    %c0_i32 = arith.constant 0 : i32
    %c0_i32_0 = arith.constant 0 : i32
    %c0_i32_1 = arith.constant 0 : i32
    return %c0_i32, %c0_i32_0 : i32, i32
  }
  func.func @transform_7(%arg0: i32) -> (i32, i32) {
    %c0_i32 = arith.constant 0 : i32
    %c0_i32_0 = arith.constant 0 : i32
    %c0_i32_1 = arith.constant 0 : i32
    return %c0_i32, %c0_i32_0 : i32, i32
  }
  func.func @transform_8(%arg0: i32) -> (i32, i32) {
    %c0_i32 = arith.constant 0 : i32
    %c0_i32_0 = arith.constant 0 : i32
    %c0_i32_1 = arith.constant 0 : i32
    return %c0_i32, %c0_i32_0 : i32, i32
  }
  func.func @transform_9(%arg0: i32) -> (i32, i32) {
    %c0_i32 = arith.constant 0 : i32
    %c0_i32_0 = arith.constant 0 : i32
    %c0_i32_1 = arith.constant 0 : i32
    return %c0_i32, %c0_i32_0 : i32, i32
  }
  func.func @transform_10(%arg0: i32) -> (i32, i32, i32) {
    %c0_i32 = arith.constant 0 : i32
    %c0_i32_0 = arith.constant 0 : i32
    %c0_i32_1 = arith.constant 0 : i32
    return %arg0, %c0_i32, %c0_i32_0 : i32, i32, i32
  }
}

</mosaic_0001>

<bundles_post_ra>
// kernel: tile.19
= control target key start
LH: loop header
LB: loop body
LE: loop exit
PB: predicated region body
PF: predicated region fallthrough
CT: control target
= control target key end

     0   :  { %vm83_vm0 = vcmask 1047556   ;;  %vm85_vm1 = vcmask 130048   ;;  %s196_s9 = smov 48   ;;  %s197_s14 = smov 16   ;;  %vm104_vm2 = vcmask 523648   ;;  %vm125_vm3 = vcmask 392448   ;;  %s290_s0 = inlined_call_operand.vmem [shape: f32[16,4,16], index: 0, kind: input, shape index: {}]   ;;  %s291_s1 = inlined_call_operand.vmem [shape: f32[16,64], index: 1, kind: output, shape index: {}]  }
   0x1   :  { %v181_v0 = vld [vmem:[%s290_s0 + $0x1c] sm:$0xf]  ;;  %v182_v1 = vld [vmem:[%s290_s0 + $0x18] sm:$0xf]  ;;  %v183_v2 = vld [vmem:[%s290_s0 + $0x14] sm:$0xf] }
   0x2   :  { %49 = vst [vmem:[#allocation0 + $0x38] sm:$0xf] %v181_v0  ;;  %54 = vst [vmem:[#allocation0 + $0x30] sm:$0xf] %v182_v1  ;;  %v184_v3 = vld [vmem:[%s290_s0 + $0x10] sm:$0xf] }
   0x3   :  { %59 = vst [vmem:[#allocation0 + $0x28] sm:$0xf] %v183_v2  ;;  %v185_v4 = vld [vmem:[%s290_s0 + $0xc] sm:$0xf]  ;;  %v186_v5 = vld [vmem:[%s290_s0 + $0x8] sm:$0xf] }
   0x4   :  { %64 = vst [vmem:[#allocation0 + $0x20] sm:$0xf] %v184_v3  ;;  %69 = vst [vmem:[#allocation0 + $0x18] sm:$0xf] %v185_v4  ;;  %v187_v6 = vld [vmem:[%s290_s0 + $0x4] sm:$0xf] }
   0x5   :  { %74 = vst [vmem:[#allocation0 + $0x10] sm:$0xf] %v186_v5  ;;  %v79_v7 = vld [vmem:[%s290_s0] sm:$0xf]  ;;  %78 = vst [vmem:[#allocation0 + $0x8] sm:$0xf] %v187_v6 }
   0x6   :  { %80 = vst [vmem:[#allocation0] sm:$0xf] %v79_v7  ;;  %v173_v8 = vld [vmem:[%s290_s0 + $0x3c] sm:$0xf]  ;;  %v174_v9 = vld [vmem:[%s290_s0 + $0x38] sm:$0xf] }
   0x7   :  { %9 = vst [vmem:[#allocation0 + $0x78] sm:$0xf] %v173_v8  ;;  %14 = vst [vmem:[#allocation0 + $0x70] sm:$0xf] %v174_v9  ;;  %v175_v10 = vld [vmem:[%s290_s0 + $0x34] sm:$0xf] }
   0x8   :  { %v176_v11 = vld [vmem:[%s290_s0 + $0x30] sm:$0xf]  ;;  %v177_v12 = vld [vmem:[%s290_s0 + $0x2c] sm:$0xf]  ;;  %19 = vst [vmem:[#allocation0 + $0x68] sm:$0xf] %v175_v10 }
   0x9   :  { %24 = vst [vmem:[#allocation0 + $0x60] sm:$0xf] %v176_v11  ;;  %29 = vst [vmem:[#allocation0 + $0x58] sm:$0xf] %v177_v12  ;;  %v178_v13 = vld [vmem:[%s290_s0 + $0x28] sm:$0xf] }
   0xa   :  { %v179_v14 = vld [vmem:[%s290_s0 + $0x24] sm:$0xf]  ;;  %v180_v15 = vld [vmem:[%s290_s0 + $0x20] sm:$0xf]  ;;  %34 = vst [vmem:[#allocation0 + $0x50] sm:$0xf] %v178_v13 }
   0xb   :  { %39 = vst [vmem:[#allocation0 + $0x48] sm:$0xf] %v179_v14  ;;  %44 = vst [vmem:[#allocation0 + $0x40] sm:$0xf] %v180_v15  ;;  %s195_s0 = smov 32   ;;  %vm146_vm4 = vcmask 261248  }
   0xc   :  { %v120_v16 = vld [vmem:[#allocation0 + $0x2] ss:$8 sm:$0xf0]   ;;  %v99_v17 = vld [vmem:[#allocation0 + $0x3] ss:$8 sm:$0xf0]  }
   0xd   :  { %v118_v18 = vld [vmem:[#allocation0 + $0x2] ss:$8 sm:$0xf]   ;;  %v97_v19 = vld [vmem:[#allocation0 + $0x3] ss:$8 sm:$0xf]  }
   0xe   :  { %v122_v20 = vsel %vm83_vm0, %v120_v16, %v118_v18  ;;  %v101_v21 = vsel %vm83_vm0, %v99_v17, %v97_v19  ;;  %v139_v24 = vld [vmem:[#allocation0 + $0x1] ss:$8 sm:$0xf]   ;;  %v81_v32 = vld [vmem:[#allocation0] ss:$8 sm:$0xf]  }
   0xf   :  { %123 = vrot.lane.b32.xlu1 %v122_v20, %s195_s0  ;;  %102 = vrot.lane.b32.xlu0 %v101_v21, %s196_s9  ;;  %v141_v25 = vld [vmem:[#allocation0 + $0x1] ss:$8 sm:$0xf0]   ;;  %v82_v33 = vld [vmem:[#allocation0] ss:$8 sm:$0xf0]  }
  0x10   :  { %v130_v22 = vld [vmem:[#allocation0 + $0x42] ss:$8 sm:$0xf0]   ;;  %v109_v23 = vld [vmem:[#allocation0 + $0x43] ss:$8 sm:$0xf0]   ;;  %v84_v34 = vsel %vm83_vm0, %v82_v33, %v81_v32  ;;  %v143_v38 = vsel %vm83_vm0, %v141_v25, %v139_v24 }
  0x11   :  { %v151_v31 = vld [vmem:[#allocation0 + $0x41] ss:$8 sm:$0xf0]   ;;  %v90_v36 = vld [vmem:[#allocation0 + $0x40] ss:$8 sm:$0xf0]  }
  0x12   :  { %v128_v26 = vld [vmem:[#allocation0 + $0x42] ss:$8 sm:$0xf]   ;;  %v107_v27 = vld [vmem:[#allocation0 + $0x43] ss:$8 sm:$0xf]  }
  0x13   :  { %v132_v28 = vsel %vm83_vm0, %v130_v22, %v128_v26  ;;  %v111_v29 = vsel %vm83_vm0, %v109_v23, %v107_v27  ;;  %v149_v30 = vld [vmem:[#allocation0 + $0x41] ss:$8 sm:$0xf]   ;;  %v88_v35 = vld [vmem:[#allocation0 + $0x40] ss:$8 sm:$0xf]  }
  0x14   :  { %133 = vrot.lane.b32.xlu1 %v132_v28, %s195_s0  ;;  %112 = vrot.lane.b32.xlu0 %v111_v29, %s196_s9  ;;  %v153_v37 = vsel %vm83_vm0, %v151_v31, %v149_v30  ;;  %86 = vst.msk [vmem:[%s291_s1] sm:$0xff] %vm85_vm1, %v84_v34   ;;  %v92_v39 = vsel %vm83_vm0, %v90_v36, %v88_v35 }
  0x15   :  { %188 = vst.msk [vmem:[%s291_s1 + $0x8] sm:$0xff] %vm85_vm1, %v92_v39  }
  0x18   :  { %154 = vrot.lane.b32.xlu1 %v153_v37, %s197_s14  ;;  %144 = vrot.lane.b32.xlu0 %v143_v38, %s197_s14 }
  0x81   :  { %v124_v40 = vpop.permute.xlu1 %123   ;;  %v103_v41 = vpop.permute.xlu0 %102  }
  0x82   :  { %105 = vst.msk [vmem:[%s291_s1] sm:$0xff] %vm104_vm2, %v103_v41  }
  0x83   :  { %126 = vst.msk [vmem:[%s291_s1] sm:$0xff] %vm125_vm3, %v124_v40  }
  0x86   :  { %v134_v42 = vpop.permute.xlu1 %133   ;;  %v113_v43 = vpop.permute.xlu0 %112  }
  0x87   :  { %189 = vst.msk [vmem:[%s291_s1 + $0x8] sm:$0xff] %vm104_vm2, %v113_v43  }
  0x88   :  { %190 = vst.msk [vmem:[%s291_s1 + $0x8] sm:$0xff] %vm125_vm3, %v134_v42  }
  0x8a   :  { %v155_v44 = vpop.permute.xlu1 %154   ;;  %v145_v45 = vpop.permute.xlu0 %144  }
  0x8b   :  { %191 = vst.msk [vmem:[%s291_s1 + $0x8] sm:$0xff] %vm146_vm4, %v155_v44   ;;  %147 = vst.msk [vmem:[%s291_s1] sm:$0xff] %vm146_vm4, %v145_v45  }

// kernel: tile.27
= control target key start
LH: loop header
LB: loop body
LE: loop exit
PB: predicated region body
PF: predicated region fallthrough
CT: control target
= control target key end

     0   :  { %vm83_vm0 = vcmask 1047556   ;;  %vm85_vm1 = vcmask 130048   ;;  %vm104_vm2 = vcmask 261248   ;;  %s226_s0 = inlined_call_operand.vmem [shape: f32[16,2,16], index: 0, kind: input, shape index: {}]   ;;  %s227_s1 = inlined_call_operand.vmem [shape: f32[16,32], index: 1, kind: output, shape index: {}]  }
   0x1   :  { %v139_v0 = vld [vmem:[%s226_s0 + $0xe] sm:$0x3]  ;;  %v140_v1 = vld [vmem:[%s226_s0 + $0xc] sm:$0x3]  ;;  %v141_v2 = vld [vmem:[%s226_s0 + $0xa] sm:$0x3] }
   0x2   :  { %49 = vst [vmem:[#allocation0 + $0x38] sm:$0x3] %v139_v0  ;;  %54 = vst [vmem:[#allocation0 + $0x30] sm:$0x3] %v140_v1  ;;  %v142_v3 = vld [vmem:[%s226_s0 + $0x8] sm:$0x3] }
   0x3   :  { %59 = vst [vmem:[#allocation0 + $0x28] sm:$0x3] %v141_v2  ;;  %v143_v4 = vld [vmem:[%s226_s0 + $0x6] sm:$0x3]  ;;  %v144_v5 = vld [vmem:[%s226_s0 + $0x4] sm:$0x3] }
   0x4   :  { %64 = vst [vmem:[#allocation0 + $0x20] sm:$0x3] %v142_v3  ;;  %69 = vst [vmem:[#allocation0 + $0x18] sm:$0x3] %v143_v4  ;;  %v145_v6 = vld [vmem:[%s226_s0 + $0x2] sm:$0x3] }
   0x5   :  { %74 = vst [vmem:[#allocation0 + $0x10] sm:$0x3] %v144_v5  ;;  %v79_v7 = vld [vmem:[%s226_s0] sm:$0x3]  ;;  %78 = vst [vmem:[#allocation0 + $0x8] sm:$0x3] %v145_v6 }
   0x6   :  { %80 = vst [vmem:[#allocation0] sm:$0x3] %v79_v7  ;;  %v131_v8 = vld [vmem:[%s226_s0 + $0x1e] sm:$0x3]  ;;  %v132_v9 = vld [vmem:[%s226_s0 + $0x1c] sm:$0x3] }
   0x7   :  { %v133_v10 = vld [vmem:[%s226_s0 + $0x1a] sm:$0x3]  ;;  %9 = vst [vmem:[#allocation0 + $0x78] sm:$0x3] %v131_v8  ;;  %14 = vst [vmem:[#allocation0 + $0x70] sm:$0x3] %v132_v9 }
   0x8   :  { %19 = vst [vmem:[#allocation0 + $0x68] sm:$0x3] %v133_v10  ;;  %v134_v11 = vld [vmem:[%s226_s0 + $0x18] sm:$0x3]  ;;  %v135_v12 = vld [vmem:[%s226_s0 + $0x16] sm:$0x3] }
   0x9   :  { %v136_v13 = vld [vmem:[%s226_s0 + $0x14] sm:$0x3]  ;;  %24 = vst [vmem:[#allocation0 + $0x60] sm:$0x3] %v134_v11  ;;  %29 = vst [vmem:[#allocation0 + $0x58] sm:$0x3] %v135_v12 }
   0xa   :  { %34 = vst [vmem:[#allocation0 + $0x50] sm:$0x3] %v136_v13  ;;  %v137_v14 = vld [vmem:[%s226_s0 + $0x12] sm:$0x3]  ;;  %v138_v15 = vld [vmem:[%s226_s0 + $0x10] sm:$0x3] }
   0xb   :  { %39 = vst [vmem:[#allocation0 + $0x48] sm:$0x3] %v137_v14  ;;  %44 = vst [vmem:[#allocation0 + $0x40] sm:$0x3] %v138_v15  ;;  %s149_s0 = smov 16  }
   0xc   :  { %v99_v16 = vld [vmem:[#allocation0 + $0x1] ss:$8 sm:$0xf0]   ;;  %v82_v17 = vld [vmem:[#allocation0] ss:$8 sm:$0xf0]  }
   0xd   :  { %v97_v18 = vld [vmem:[#allocation0 + $0x1] ss:$8 sm:$0xf]   ;;  %v81_v19 = vld [vmem:[#allocation0] ss:$8 sm:$0xf]  }
   0xe   :  { %v101_v20 = vsel %vm83_vm0, %v99_v16, %v97_v18  ;;  %v84_v21 = vsel %vm83_vm0, %v82_v17, %v81_v19 }
   0xf   :  { %102 = vrot.lane.b32.xlu0 %v101_v20, %s149_s0  ;;  %86 = vst.msk [vmem:[%s227_s1] sm:$0xff] %vm85_vm1, %v84_v21  }
  0x10   :  { %v109_v22 = vld [vmem:[#allocation0 + $0x41] ss:$8 sm:$0xf0]   ;;  %v90_v23 = vld [vmem:[#allocation0 + $0x40] ss:$8 sm:$0xf0]  }
  0x12   :  { %v107_v24 = vld [vmem:[#allocation0 + $0x41] ss:$8 sm:$0xf]   ;;  %v88_v25 = vld [vmem:[#allocation0 + $0x40] ss:$8 sm:$0xf]  }
  0x13   :  { %v111_v26 = vsel %vm83_vm0, %v109_v22, %v107_v24  ;;  %v92_v27 = vsel %vm83_vm0, %v90_v23, %v88_v25 }
  0x14   :  { %146 = vst.msk [vmem:[%s227_s1 + $0x8] sm:$0xff] %vm85_vm1, %v92_v27   ;;  %112 = vrot.lane.b32.xlu0 %v111_v26, %s149_s0 }
  0x81   :  { %v103_v28 = vpop.permute.xlu0 %102  }
  0x82   :  { %105 = vst.msk [vmem:[%s227_s1] sm:$0xff] %vm104_vm2, %v103_v28  }
  0x86   :  { %v113_v29 = vpop.permute.xlu0 %112  }
  0x87   :  { %147 = vst.msk [vmem:[%s227_s1 + $0x8] sm:$0xff] %vm104_vm2, %v113_v29  }

// kernel: attention_forward.1
= control target key start
LH: loop header
LB: loop body
LE: loop exit
PB: predicated region body
PF: predicated region fallthrough
CT: control target
= control target key end

     0   :  { %15 = vsyncpa [#allocation3], 0  ;;  %s2497_s0 = inlined_call_operand.vmem [shape: f32[2,16,64], index: 0, kind: input, shape index: {}]   ;;  %s2498_s1 = inlined_call_operand.vmem [shape: f32[2,1,16], index: 1, kind: input, shape index: {}]   ;;  %s2499_s2 = inlined_call_operand.vmem [shape: f32[16,64], index: 2, kind: input, shape index: {}]   ;;  %s2500_s3 = inlined_call_operand.vmem [shape: f32[16,64], index: 3, kind: input, shape index: {}]   ;;  %s2501_s4 = inlined_call_operand.vmem [shape: f32[16,32], index: 4, kind: input, shape index: {}]   ;;  %s2502_s5 = inlined_call_operand.vmem [shape: f32[16,32], index: 5, kind: input, shape index: {}]   ;;  %s2503_s6 = inlined_call_operand.vmem [shape: f32[64,64], index: 6, kind: input, shape index: {}]   ;;  %s2504_s7 = inlined_call_operand.vmem [shape: f32[32,32], index: 7, kind: input, shape index: {}]   ;;  %s2505_s8 = inlined_call_operand.vmem [shape: f32[64,128], index: 8, kind: input, shape index: {}]   ;;  %s2506_s9 = inlined_call_operand.vmem [shape: f32[64,64], index: 9, kind: input, shape index: {}]   ;;  %s2507_s10 = inlined_call_operand.hbm [shape: f32[2,16,64], index: 10, kind: output, shape index: {}]  }
   0x1   :  { %17 = vsyncpa [#allocation3 + $0x1], 0  ;;  %s2128_s13 = smov 0   ;;  %s2130_s14 = smov 0  }
   0x2   :  { %s2132_s15 = smov 0   ;;  %s2134_s16 = smov 0  }
   0x3 LB: > { %s2149_s17 = sadd.s32 4294967295, %s2061_s16   ;;  %s1682_s18 = sadd.s32 4294967294, %s2061_s16   ;;  %s2061_s16 = sphi %s2134_s16, %s2516_s16   ;;  %s2057_s15 = sphi %s2132_s15, %s2515_s15   ;;  %s2053_s14 = sphi %s2130_s14, %s2514_s14   ;;  %s2049_s13 = sphi %s2128_s13, %s2513_s13  }
   0x4   : > { %s2153_s19 = sadd.s32 1, %s2061_s16   ;;  %s250_s20 = sadd.s32 1, %s2057_s15 }
   0x5   : > { %s247_s21 = ssub.s32 %s2061_s16, %s2153_s19  ;;  %p260_p0 = scmp.ne.s32.totalorder %s2057_s15, %s2053_s14 }
   0x6   : > { %p248_p1 = scmp.eq.s32.totalorder %s247_s21, 0  ;;  %p261_p2 = scmp.eq.s32.totalorder %s2149_s17, 1 }
   0x7   : > { %p266_p3 = scmp.ne.s32.totalorder %s2053_s14, %s2049_s13  ;;  %p267_p4 = scmp.eq.s32.totalorder %s1682_s18, 1 }
   0x8   : > { %s2164_s22 = scalar_select %p248_p1, %s2057_s15, %s250_s20  }
   0x9   : > { %p2166_p5 = por %p261_p2, %p260_p0  ;;  %p2170_p6 = por %p267_p4, %p266_p3 }
   0xa   : > { %p1685_p7 = scmp.ge.s32.totalorder %s2061_s16, 1  ;;  %p323_p8 = scmp.lt.s32.totalorder %s2061_s16, 3 }
   0xc   : > { %p324_p9 = pnand %p1685_p7, %p323_p8 }
   0xd   : > { %p364_p10 = scmp.lt.s32.totalorder (!%p324_p9), %s2149_s17, 1  ;;  %s2508_s20 = smov (!%p324_p9), 64  }
   0xe   : > { %327 = sbr.rel (%p324_p9) target bundleno = 2920 (0xb68), region = 60  ;;  %s2512_s27 = smov (!%p324_p9), 64  }
   0xf   : > { %s2066_s21 = smov (!%p324_p9), 48   ;;  %s2067_s25 = smov (!%p324_p9), 96  }
  0x10   : > { %s2069_s26 = smov (!%p324_p9), 80  }
  0x13   : > { %v381_v0 = vld [vmem:[%s2505_s8 + $0x38] sm:$0xff]  ;;  %v380_v1 = vld [vmem:[%s2505_s8 + $0x30] sm:$0xff]  ;;  %v379_v2 = vld [vmem:[%s2505_s8 + $0x28] sm:$0xff]  ;;  %s2187_s11 = scalar_select %p364_p10, %s2149_s17, 1  ;;  %vm382_vm0 = vcmask 523264   ;;  %vm583_vm1 = vcmask 261120   ;;  %v775_v58 = vlaneseq }
  0x14   : > { %1797 = vmatprep.subr.mxu0 %v381_v0  ;;  %v564_v3 = vld [vmem:[%s2501_s4 + $0x8] sm:$0xff]  ;;  %v475_v4 = vld [vmem:[%s2503_s6 + $0x38] sm:$0xff]  ;;  %v474_v5 = vld [vmem:[%s2503_s6 + $0x30] sm:$0xff]  ;;  %vm686_vm2 = vcmask 130048   ;;  %vm1503_vm3 = vcmask 392192  }
  0x15   : > { %1798 = vmatpush3.msra.mxu0 %v381_v0  ;;  %569 = vrot.lane.b32.xlu1 %v564_v3, %s2508_s20  ;;  %v378_v6 = vld [vmem:[%s2505_s8 + $0x20] sm:$0xff]  ;;  %s1727_s30 = sshll.u32 %s2187_s11, 4  ;;  %v377_v7 = vld [vmem:[%s2505_s8 + $0x18] sm:$0xff]  ;;  %v473_v9 = vld [vmem:[%s2503_s6 + $0x28] sm:$0xff]  ;;  %s371_s18 = scalar_lea.vmem %s2498_s1, %s2187_s11  ;;  %v776_v61 = vshrl.u32 %v775_v58, 7 }
  0x16   : > { %1799 = vmatprep.subr.mxu0 %v380_v1  ;;  %1816 = vmatprep.subr.mxu1 %v475_v4  ;;  %s368_s20 = scalar_lea.vmem %s2497_s0, %s1727_s30  ;;  %v376_v10 = vld [vmem:[%s2505_s8 + $0x10] sm:$0xff]  ;;  %v472_v11 = vld [vmem:[%s2503_s6 + $0x20] sm:$0xff]  ;;  %v375_v12 = vld [vmem:[%s2505_s8 + $0x8] sm:$0xff]  ;;  %s2064_s30 = smov 112  }
  0x17   : > { %1800 = vmatpush3.msra.mxu0 %v380_v1  ;;  %1817 = vmatpush3.msra.mxu1 %v475_v4  ;;  %v372_v8 = vld [vmem:[%s368_s20] sm:$0xff]  ;;  %v471_v13 = vld [vmem:[%s2503_s6 + $0x18] sm:$0xff]  ;;  %v470_v15 = vld [vmem:[%s2503_s6 + $0x10] sm:$0xff]  ;;  %v777_v63 = vsub.s32 0, %v776_v61  ;;  %s2065_s11 = smov 32  }
  0x18   : > { %1801 = vmatprep.subr.mxu0 %v379_v2  ;;  %1818 = vmatprep.subr.mxu1 %v474_v5  ;;  %v374_v14 = vld [vmem:[%s2505_s8] sm:$0xff]  ;;  %v373_v16 = vld [vmem:[%s368_s20 + $0x8] sm:$0xff]  ;;  %v578_v19 = vld [vmem:[%s2504_s7 + $0x18] sm:$0xff]  ;;  %s2068_s20 = smov 16  }
  0x19   : > { %1802 = vmatpush3.msra.mxu0 %v379_v2  ;;  %1813 = vmatprep.mubr.msk.f32.mxu0 %vm382_vm0, %v372_v8  ;;  %v469_v17 = vld [vmem:[%s2503_s6 + $0x8] sm:$0xff]  ;;  %v468_v18 = vld [vmem:[%s2503_s6] sm:$0xff]  ;;  %v577_v22 = vld [vmem:[%s2504_s7 + $0x10] sm:$0xff] }
  0x1a   : > { %1803 = vmatprep.subr.mxu0 %v378_v6  ;;  %1819 = vmatpush3.msra.mxu1 %v474_v5  ;;  %v576_v23 = vld [vmem:[%s2504_s7 + $0x8] sm:$0xff]  ;;  %v575_v24 = vld [vmem:[%s2504_s7] sm:$0xff] }
  0x1b   : > { %1804 = vmatpush3.msra.mxu0 %v378_v6  ;;  %1820 = vmatprep.subr.mxu1 %v473_v9  ;;  %v563_v25 = vld [vmem:[%s2501_s4] sm:$0xff]  ;;  %v664_v35 = vld [vmem:[%s2502_s5 + $0x8] sm:$0xff] }
  0x1c   : > { %1805 = vmatprep.subr.mxu0 %v377_v7  ;;  %1821 = vmatpush3.msra.mxu1 %v473_v9  ;;  %v464_v29 = vld [vmem:[%s2499_s2] sm:$0xff]  ;;  %v558_v46 = vld [vmem:[%s2500_s3 + $0x8] sm:$0xff] }
  0x1d   : > { %1806 = vmatpush3.msra.mxu0 %v377_v7  ;;  %1822 = vmatprep.subr.mxu1 %v472_v11  ;;  %v557_v30 = vld [vmem:[%s2500_s3] sm:$0xff]  ;;  %v465_v48 = vld [vmem:[%s2499_s2 + $0x8] sm:$0xff] }
  0x1e   : > { %1807 = vmatprep.subr.mxu0 %v376_v10  ;;  %1823 = vmatpush3.msra.mxu1 %v472_v11  ;;  %v663_v39 = vld [vmem:[%s2502_s5] sm:$0xff] }
  0x1f   : > { %1808 = vmatpush3.msra.mxu0 %v376_v10  ;;  %1824 = vmatprep.subr.mxu1 %v471_v13  ;;  %v677_v59 = vld [vmem:[%s371_s18] sm:$0x1] }
  0x20   : > { %1809 = vmatprep.subr.mxu0 %v375_v12  ;;  %1825 = vmatpush3.msra.mxu1 %v471_v13  ;;  %v1695_v60 = vadd.f32 -1.0, %v677_v59 }
  0x21   : > { %1810 = vmatpush3.msra.mxu0 %v375_v12  ;;  %1826 = vmatprep.subr.mxu1 %v470_v15 }
  0x22   : > { %1811 = vmatprep.subr.mxu0 %v374_v14  ;;  %1827 = vmatpush3.msra.mxu1 %v470_v15  ;;  %v679_v62 = vmul.f32 1e+30, %v1695_v60 }
  0x23   : > { %1812 = vmatpush3.msra.mxu0 %v374_v14  ;;  %1828 = vmatprep.subr.mxu1 %v469_v17 }
  0x24   : > { %1814 = vmatmul.mubr.msk.f32.vlgmr.msra.gmra.mxu0 %vm382_vm0, %v373_v16  ;;  %1829 = vmatpush3.msra.mxu1 %v469_v17  ;;  %v2324_v0 = vrot.slane %v679_v62, %v777_v63 }
  0x25   : > { %1830 = vmatprep.subr.mxu1 %v468_v18 }
  0x26   : > { %1831 = vmatpush3.msra.mxu1 %v468_v18 }
  0x27   : > { %1835 = vmatprep.subr.mxu1 %v578_v19 }
  0x87   : > { %v570_v41 = vpop.permute.xlu1 %569 }
  0xe4   : > { %v2241_v20 = vpop.f32.mrf.mxu0 }
  0xe5   : > { %v574_v42 = vmul.f32 %v2241_v20, %v570_v41  ;;  %v467_v52 = vmul.f32 %v2241_v20, %v465_v48 }
  0xe6   : > { %v2243_v21 = vpop.f32.mrf.mxu0 }
  0xe7   : > { %579 = vrot.lane.b32.xlu0 %v2243_v21, %s2512_s27  ;;  %1832 = vmatprep.mubr.msk.f32.mxu1 %vm382_vm0, %v2243_v21  ;;  %v466_v32 = vmul.f32 %v464_v29, %v2243_v21 }
  0xe8   : > { %1833 = vmatmul.mubr.msk.f32.vlgmr.msra.gmra.mxu1 %vm382_vm0, %v2241_v20 }
  0xe9   : > { %1836 = vmatpush3.msra.mxu1 %v578_v19 }
  0xea   : > { %1837 = vmatprep.subr.mxu1 %v577_v22 }
  0xeb   : > { %581 = vrot.lane.b32.xlu0 %v2241_v20, %s2512_s27  ;;  %1838 = vmatpush3.msra.mxu1 %v577_v22 }
  0xec   : > { %1839 = vmatprep.subr.mxu1 %v576_v23 }
  0xed   : > { %1840 = vmatpush3.msra.mxu1 %v576_v23 }
  0xee   : > { %1841 = vmatprep.subr.mxu1 %v575_v24 }
  0xef   : > { %567 = vrot.lane.b32.xlu0 %v563_v25, %s2512_s27  ;;  %1842 = vmatpush3.msra.mxu1 %v575_v24 }
 0x159   : > { %v580_v26 = vpop.permute.xlu0 %579 }
 0x15a   : > { %1843 = vmatprep.mubr.msk.f32.mxu1 %vm583_vm1, %v580_v26 }
 0x15d   : > { %v582_v27 = vpop.permute.xlu0 %581 }
 0x15e   : > { %1844 = vmatmul.mubr.msk.f32.vlgmr.msra.gmra.mxu1 %vm583_vm1, %v582_v27 }
 0x161   : > { %v568_v43 = vpop.permute.xlu0 %567 }
 0x162   : > { %v573_v47 = vmul.f32 %v568_v43, %v2243_v21 }
 0x1a8   : > { %v1834_v28 = vpop.f32.mrf.mxu1 }
 0x1a9   : > { %v560_v50 = vmul.f32 %v1834_v28, %v558_v46 }
 0x1aa   : > { %v548_v31 = vpop.f32.mrf.mxu1 }
 0x1ab   : > { %v559_v33 = vmul.f32 %v557_v30, %v548_v31  ;;  %v2305_v53 = vadd.f32 %v560_v50, %v467_v52 }
 0x1ad   : > { %v2275_v34 = vadd.f32 %v559_v33, %v466_v32 }
 0x1af   : > { %1850 = vmatprep.mubr.msk.f32.mxu1 %vm686_vm2, %v2275_v34 }
 0x21e   : > { %v1845_v36 = vpop.f32.mrf.mxu1 }
 0x21f   : > { %v666_v37 = vmul.f32 %v1845_v36, %v664_v35 }
 0x220   : > { %v654_v38 = vpop.f32.mrf.mxu1 }
 0x221   : > { %671 = vrot.lane.b32.xlu1 %v666_v37, %s2512_s27  ;;  %v665_v40 = vmul.f32 %v663_v39, %v654_v38 }
 0x225   : > { %669 = vrot.lane.b32.xlu1 %v665_v40, %s2512_s27 }
 0x293   : > { %v672_v44 = vpop.permute.xlu1 %671 }
 0x294   : > { %v2288_v45 = vadd.f32 %v672_v44, %v574_v42 }
 0x296   : > { %684 = vrot.lane.b32.xlu0 %v2288_v45, %s2512_s27 }
 0x297   : > { %v670_v49 = vpop.permute.xlu1 %669 }
 0x298   : > { %v2299_v51 = vadd.f32 %v670_v49, %v573_v47 }
 0x29a   : > { %682 = vrot.lane.b32.xlu1 %v2299_v51, %s2512_s27  ;;  %891 = vrot.lane.b32.xlu0 %v2275_v34, %s2064_s30 }
 0x29e   : > { %893 = vrot.lane.b32.xlu1 %v2305_v53, %s2064_s30 }
 0x308   : > { %v685_v54 = vpop.permute.xlu0 %684 }
 0x309   : > { %1846 = vmatprep.subr.msk.mxu1 %vm686_vm2, %v685_v54 }
 0x30a   : > { %1847 = vmatpush3.xpose.msk.msra.mxu1 %vm686_vm2, %v685_v54 }
 0x30c   : > { %v683_v55 = vpop.permute.xlu1 %682  ;;  %v892_v56 = vpop.permute.xlu0 %891 }
 0x30d   : > { %1848 = vmatprep.subr.msk.mxu1 %vm686_vm2, %v683_v55 }
 0x30e   : > { %1849 = vmatpush3.xpose.msk.msra.mxu1 %vm686_vm2, %v683_v55 }
 0x30f   : > { %1860 = vmatprep.subr.msk.mxu1 %vm686_vm2, %v685_v54 }
 0x310   : > { %v894_v57 = vpop.permute.xlu1 %893 }
 0x311   : > { %1851 = vmatmul.mubr.msk.f32.vlgmr.msra.gmra.mxu1 %vm686_vm2, %v2305_v53 }
 0x312   : > { %1861 = vmatpush3.xpose.msk.msra.mxu1 %vm686_vm2, %v685_v54  ;;  %1864 = vmatprep.mubr.msk.f32.mxu1 %vm686_vm2, %v892_v56 }
 0x313   : > { %1862 = vmatprep.subr.msk.mxu1 %vm686_vm2, %v683_v55 }
 0x316   : > { %1863 = vmatpush3.xpose.msk.msra.mxu1 %vm686_vm2, %v683_v55 }
 0x319   : > { %1865 = vmatmul.mubr.msk.f32.vlgmr.msra.gmra.mxu1 %vm686_vm2, %v894_v57 }
 0x3d1   : > { %v1852_v1 = vpop.f32.mrf.mxu1 }
 0x3d2   : > { %v773_v2 = vmul.f32 0.25, %v1852_v1 }
 0x3d3   : > { %v763_v3 = vpop.f32.mrf.mxu1 }
 0x3d4   : > { %v772_v4 = vmul.f32 0.25, %v763_v3  ;;  %v781_v5 = vadd.f32 %v2324_v0, %v773_v2 }
 0x3d6   : > { %v785_v6 = vsel %vm686_vm2, %v781_v5, -inf  ;;  %v780_v7 = vadd.f32 %v2324_v0, %v772_v4 }
 0x3d7   : > { %786 = vmax.xlane.f32.xlu1 %v785_v6 }
 0x3d8   : > { %v782_v8 = vsel %vm686_vm2, %v780_v7, -inf }
 0x3d9   : > { %v1866_v9 = vpop.f32.mrf.mxu1  ;;  %783 = vmax.xlane.f32.xlu0 %v782_v8 }
 0x3da   : > { %v975_v11 = vmul.f32 0.25, %v1866_v9 }
 0x3db   : > { %v965_v10 = vpop.f32.mrf.mxu1 }
 0x3dc   : > { %v974_v12 = vmul.f32 0.25, %v965_v10  ;;  %v977_v15 = vadd.f32 %v975_v11, %v2324_v0 }
 0x3de   : > { %v976_v13 = vadd.f32 %v974_v12, %v2324_v0  ;;  %v981_v16 = vsel %vm686_vm2, %v977_v15, -inf }
 0x3e0   : > { %v978_v14 = vsel %vm686_vm2, %v976_v13, -inf }
 0x3e1   : > { %979 = vmax.xlane.f32.xlu0 %v978_v14 }
 0x3e5   : > { %982 = vmax.xlane.f32.xlu0 %v981_v16 }
 0x3e8   : > { %806 = vrot.lane.b32.xlu1 %v2241_v20, %s2065_s11 }
 0x460   : > { %v787_v17 = vpop.xlane.xlu1 %786 }
 0x461   : > { %v789_v18 = vsub.f32 %v781_v5, %v787_v17 }
 0x462   : > { %v784_v19 = vpop.xlane.xlu0 %783 }
 0x463   : > { %v792_v22 = vmul.f32 1.442695, %v789_v18  ;;  %v788_v23 = vsub.f32 %v780_v7, %v784_v19 }
 0x464   : > { %v807_v24 = vpop.permute.xlu1 %806 }
 0x465   : > { %1969 = vpow2.f32 %v792_v22  ;;  %v790_v25 = vmul.f32 1.442695, %v788_v23  ;;  %1853 = vmatprep.subr.mxu0 %v807_v24 }
 0x466   : > { %1854 = vmatpush3.msra.mxu0 %v807_v24 }
 0x467   : > { %1971 = vpow2.f32 %v790_v25 }
 0x46a   : > { %v980_v26 = vpop.xlane.xlu0 %979 }
 0x46b   : > { %v984_v37 = vsub.f32 %v976_v13, %v980_v26 }
 0x46d   : > { %v986_v38 = vmul.f32 1.442695, %v984_v37 }
 0x46e   : > { %v983_v27 = vpop.xlane.xlu0 %982 }
 0x46f   : > { %v985_v28 = vsub.f32 %v977_v15, %v983_v27 }
 0x471   : > { %v988_v29 = vmul.f32 1.442695, %v985_v28 }
 0x472   : > { %v1970_v30 = vpop.eup %1969 }
 0x473   : > { %1973 = vpow2.f32 %v988_v29  ;;  %v797_v31 = vsel %vm686_vm2, %v1970_v30, 0.0 }
 0x474   : > { %v1972_v32 = vpop.eup %1971  ;;  %798 = vadd.xlane.f32.xlu0 %v797_v31  ;;  %1975 = vpow2.f32 %v986_v38 }
 0x475   : > { %v794_v33 = vsel %vm686_vm2, %v1972_v32, 0.0 }
 0x476   : > { %795 = vadd.xlane.f32.xlu1 %v794_v33 }
 0x480   : > { %v1974_v35 = vpop.eup %1973 }
 0x481   : > { %v993_v36 = vsel %vm686_vm2, %v1974_v35, 0.0  ;;  %v1976_v39 = vpop.eup %1975 }
 0x482   : > { %994 = vadd.xlane.f32.xlu0 %v993_v36  ;;  %v990_v40 = vsel %vm686_vm2, %v1976_v39, 0.0 }
 0x487   : > { %1087 = vrot.lane.b32.xlu1 %v2288_v45, %s2066_s21 }
 0x48b   : > { %1085 = vrot.lane.b32.xlu1 %v2299_v51, %s2066_s21 }
 0x498   : > { %804 = vrot.lane.b32.xlu0 %v2243_v21, %s2065_s11 }
 0x49c   : > { %1081 = vrot.lane.b32.xlu0 %v2275_v34, %s2067_s25 }
 0x4af   : > { %991 = vadd.xlane.f32.xlu1 %v990_v40 }
 0x4c0   : > { %1083 = vrot.lane.b32.xlu1 %v2305_v53, %s2067_s25 }
 0x4fd   : > { %v799_v41 = vpop.xlane.xlu0 %798 }
 0x4fe   : > { %1977 = vrcp.f32 %v799_v41 }
 0x4ff   : > { %v796_v42 = vpop.xlane.xlu1 %795 }
 0x500   : > { %1979 = vrcp.f32 %v796_v42 }
 0x503   : > { %v2350_v49 = vpop.permute.xlu1 %1087 }
 0x507   : > { %v2354_v50 = vpop.permute.xlu1 %1085 }
 0x50b   : > { %v995_v43 = vpop.xlane.xlu0 %994  ;;  %v1978_v44 = vpop.eup %1977 }
 0x50c   : > { %v803_v48 = vmul.f32 %v1978_v44, %v1970_v30  ;;  %1981 = vrcp.f32 %v995_v43 }
 0x50d   : > { %v1980_v45 = vpop.eup %1979 }
 0x50e   : > { %v802_v46 = vmul.f32 %v1980_v45, %v1972_v32 }
 0x50f   : > { %v805_v47 = vpop.permute.xlu0 %804 }
 0x510   : > { %1855 = vmatprep.subr.mxu0 %v805_v47  ;;  %1857 = vmatprep.mubr.msk.f32.mxu0 %vm686_vm2, %v802_v46 }
 0x511   : > { %1856 = vmatpush3.msra.mxu0 %v805_v47 }
 0x512   : > { %1858 = vmatmul.mubr.msk.f32.vlgmr.msra.gmra.mxu0 %vm686_vm2, %v803_v48  ;;  %1867 = vmatprep.subr.mxu0 %v807_v24 }
 0x513   : > { %1868 = vmatpush3.msra.mxu0 %v807_v24  ;;  %v1082_v57 = vpop.permute.xlu0 %1081 }
 0x514   : > { %1869 = vmatprep.subr.mxu0 %v805_v47 }
 0x515   : > { %1870 = vmatpush3.msra.mxu0 %v805_v47 }
 0x516   : > { %1874 = vmatprep.subr.msk.mxu0 %vm686_vm2, %v2350_v49 }
 0x519   : > { %v1982_v52 = vpop.eup %1981 }
 0x51a   : > { %v999_v56 = vmul.f32 %v1982_v52, %v1974_v35  ;;  %v1513_v52 = vld [vmem:[%s2506_s9 + $0x38] sm:$0xff] }
 0x538   : > { %v992_v51 = vpop.xlane.xlu1 %991 }
 0x539   : > { %1983 = vrcp.f32 %v992_v51 }
 0x53c   : > { %v1084_v58 = vpop.permute.xlu1 %1083 }
 0x546   : > { %v1984_v54 = vpop.eup %1983 }
 0x547   : > { %v998_v55 = vmul.f32 %v1984_v54, %v1976_v39  ;;  %v1512_v54 = vld [vmem:[%s2506_s9 + $0x30] sm:$0xff] }
 0x549   : > { %1871 = vmatprep.mubr.msk.f32.mxu0 %vm686_vm2, %v998_v55  ;;  %v1511_v55 = vld [vmem:[%s2506_s9 + $0x28] sm:$0xff] }
 0x54a   : > { %1872 = vmatmul.mubr.msk.f32.vlgmr.msra.gmra.mxu0 %vm686_vm2, %v999_v56  ;;  %v1510_v56 = vld [vmem:[%s2506_s9 + $0x20] sm:$0xff] }
 0x54b   : > { %1875 = vmatpush3.xpose.msk.msra.mxu0 %vm686_vm2, %v2350_v49  ;;  %1878 = vmatprep.mubr.msk.f32.mxu0 %vm686_vm2, %v1082_v57  ;;  %v1509_v57 = vld [vmem:[%s2506_s9 + $0x18] sm:$0xff] }
 0x54c   : > { %1876 = vmatprep.subr.msk.mxu0 %vm686_vm2, %v2354_v50 }
 0x54f   : > { %1877 = vmatpush3.xpose.msk.msra.mxu0 %vm686_vm2, %v2354_v50 }
 0x552   : > { %1879 = vmatmul.mubr.msk.f32.vlgmr.msra.gmra.mxu0 %vm686_vm2, %v1084_v58  ;;  %v1508_v58 = vld [vmem:[%s2506_s9 + $0x10] sm:$0xff] }
 0x5d2   : > { %v2366_v59 = vpop.f32.mrf.mxu0 }
 0x5d4   : > { %v2368_v60 = vpop.f32.mrf.mxu0 }
 0x60a   : > { %v2370_v61 = vpop.f32.mrf.mxu0 }
 0x60c   : > { %v2372_v62 = vpop.f32.mrf.mxu0 }
 0x612   : > { %v1880_v63 = vpop.f32.mrf.mxu0 }
 0x613   : > { %v1173_v1 = vmul.f32 0.25, %v1880_v63 }
 0x614   : > { %v1163_v2 = vpop.f32.mrf.mxu0 }
 0x615   : > { %v1172_v3 = vmul.f32 0.25, %v1163_v2  ;;  %v1175_v4 = vadd.f32 %v1173_v1, %v2324_v0 }
 0x617   : > { %v1179_v5 = vsel %vm686_vm2, %v1175_v4, -inf  ;;  %v1174_v6 = vadd.f32 %v1172_v3, %v2324_v0 }
 0x618   : > { %1180 = vmax.xlane.f32.xlu1 %v1179_v5 }
 0x619   : > { %v1176_v7 = vsel %vm686_vm2, %v1174_v6, -inf }
 0x61a   : > { %1177 = vmax.xlane.f32.xlu0 %v1176_v7 }
 0x629   : > { %1200 = vrot.lane.b32.xlu1 %v2241_v20, %s2068_s20 }
 0x62d   : > { %1285 = vrot.lane.b32.xlu1 %v2275_v34, %s2069_s26 }
 0x631   : > { %1287 = vrot.lane.b32.xlu1 %v2305_v53, %s2069_s26  ;;  %s1728_s26 = sshll.u32 %s2149_s17, 8  ;;  %s2070_s17 = smov [#allocation2]  }
 0x632   : > { %s2453_s30 = scalar_lea.hbm %s2507_s10, %s1728_s26  ;;  %s2005_s18 = sshll.u32 %s2070_s17, 4  ;;  %s2006_s18 = int_to_ptr.vmem [resolvable:$false] %s2005_s18 }
 0x6a1   : > { %v1181_v8 = vpop.xlane.xlu1 %1180 }
 0x6a2   : > { %v1183_v9 = vsub.f32 %v1175_v4, %v1181_v8 }
 0x6a3   : > { %v1178_v10 = vpop.xlane.xlu0 %1177 }
 0x6a4   : > { %v1186_v11 = vmul.f32 1.442695, %v1183_v9  ;;  %v1182_v12 = vsub.f32 %v1174_v6, %v1178_v10 }
 0x6a5   : > { %v1201_v13 = vpop.permute.xlu1 %1200 }
 0x6a6   : > { %1985 = vpow2.f32 %v1186_v11  ;;  %v1184_v14 = vmul.f32 1.442695, %v1182_v12  ;;  %1881 = vmatprep.subr.mxu1 %v1201_v13  ;;  %1895 = vmatprep.subr.mxu0 %v1201_v13 }
 0x6a7   : > { %1882 = vmatpush3.msra.mxu1 %v1201_v13  ;;  %1896 = vmatpush3.msra.mxu0 %v1201_v13 }
 0x6a8   : > { %1987 = vpow2.f32 %v1184_v14 }
 0x6a9   : > { %v1286_v25 = vpop.permute.xlu1 %1285 }
 0x6b3   : > { %v1986_v15 = vpop.eup %1985 }
 0x6b4   : > { %v1191_v20 = vsel %vm686_vm2, %v1986_v15, 0.0 }
 0x6b5   : > { %v1988_v16 = vpop.eup %1987  ;;  %1192 = vadd.xlane.f32.xlu0 %v1191_v20 }
 0x6b6   : > { %v1188_v34 = vsel %vm686_vm2, %v1988_v16, 0.0 }
 0x6b9   : > { %1189 = vadd.xlane.f32.xlu0 %v1188_v34 }
 0x6cf   : > { %1198 = vrot.lane.b32.xlu0 %v2243_v21, %s2068_s20  ;;  %v1288_v21 = vpop.permute.xlu1 %1287 }
 0x73e   : > { %v1193_v53 = vpop.xlane.xlu0 %1192 }
 0x73f   : > { %1989 = vrcp.f32 %v1193_v53 }
 0x742   : > { %v1190_v17 = vpop.xlane.xlu0 %1189 }
 0x743   : > { %1991 = vrcp.f32 %v1190_v17 }
 0x746   : > { %v1199_v18 = vpop.permute.xlu0 %1198 }
 0x747   : > { %1883 = vmatprep.subr.mxu1 %v1199_v18  ;;  %1897 = vmatprep.subr.mxu0 %v1199_v18 }
 0x748   : > { %1884 = vmatpush3.msra.mxu1 %v1199_v18  ;;  %1898 = vmatpush3.msra.mxu0 %v1199_v18 }
 0x749   : > { %1888 = vmatprep.subr.msk.mxu1 %vm686_vm2, %v2350_v49  ;;  %1902 = vmatprep.subr.mxu0 %v1513_v52 }
 0x74c   : > { %v1990_v19 = vpop.eup %1989 }
 0x74d   : > { %v1197_v24 = vmul.f32 %v1990_v19, %v1986_v15 }
 0x750   : > { %v1992_v22 = vpop.eup %1991 }
 0x751   : > { %v1196_v23 = vmul.f32 %v1992_v22, %v1988_v16 }
 0x753   : > { %1885 = vmatprep.mubr.msk.f32.mxu1 %vm686_vm2, %v1196_v23 }
 0x754   : > { %1886 = vmatmul.mubr.msk.f32.vlgmr.msra.gmra.mxu1 %vm686_vm2, %v1197_v24 }
 0x755   : > { %1889 = vmatpush3.xpose.msk.msra.mxu1 %vm686_vm2, %v2350_v49  ;;  %1892 = vmatprep.mubr.msk.f32.mxu1 %vm686_vm2, %v1286_v25 }
 0x756   : > { %1890 = vmatprep.subr.msk.mxu1 %vm686_vm2, %v2354_v50 }
 0x759   : > { %1891 = vmatpush3.xpose.msk.msra.mxu1 %vm686_vm2, %v2354_v50 }
 0x75c   : > { %1893 = vmatmul.mubr.msk.f32.vlgmr.msra.gmra.mxu1 %vm686_vm2, %v1288_v21 }
 0x814   : > { %v1887_v26 = vpop.f32.mrf.mxu1 }
 0x816   : > { %v1276_v27 = vpop.f32.mrf.mxu1 }
 0x81c   : > { %v1894_v28 = vpop.f32.mrf.mxu1 }
 0x81d   : > { %v1369_v29 = vmul.f32 0.25, %v1894_v28 }
 0x81e   : > { %v1359_v30 = vpop.f32.mrf.mxu1 }
 0x81f   : > { %v1368_v31 = vmul.f32 0.25, %v1359_v30  ;;  %v1371_v32 = vadd.f32 %v1369_v29, %v2324_v0 }
 0x821   : > { %v1370_v33 = vadd.f32 %v1368_v31, %v2324_v0  ;;  %v1375_v35 = vsel %vm686_vm2, %v1371_v32, -inf }
 0x822   : > { %1376 = vmax.xlane.f32.xlu1 %v1375_v35 }
 0x823   : > { %v1372_v36 = vsel %vm686_vm2, %v1370_v33, -inf }
 0x824   : > { %1373 = vmax.xlane.f32.xlu0 %v1372_v36 }
 0x833   : > { %1477 = vrot.lane.b32.xlu1 %v2372_v62, %s2068_s20  ;;  %v1506_v62 = vld [vmem:[%s2506_s9] sm:$0xff] }
 0x837   : > { %1485 = vrot.lane.b32.xlu1 %v1276_v27, %s2065_s11 }
 0x83b   : > { %1487 = vrot.lane.b32.xlu1 %v1887_v26, %s2065_s11 }
 0x8ab   : > { %v1377_v37 = vpop.xlane.xlu1 %1376 }
 0x8ac   : > { %v1379_v38 = vsub.f32 %v1371_v32, %v1377_v37 }
 0x8ad   : > { %v1374_v39 = vpop.xlane.xlu0 %1373 }
 0x8ae   : > { %v1378_v40 = vsub.f32 %v1370_v33, %v1374_v39  ;;  %v1382_v41 = vmul.f32 1.442695, %v1379_v38 }
 0x8af   : > { %v1478_v2 = vpop.permute.xlu1 %1477 }
 0x8b0   : > { %v1380_v42 = vmul.f32 1.442695, %v1378_v40  ;;  %v1499_v7 = vsel %vm686_vm2, %v2368_v60, %v1478_v2 }
 0x8b2   : > { %1993 = vpow2.f32 %v1380_v42 }
 0x8b3   : > { %1995 = vpow2.f32 %v1382_v41  ;;  %v1486_v3 = vpop.permute.xlu1 %1485 }
 0x8b4   : > { %v1501_v9 = vsel %vm583_vm1, %v1499_v7, %v1486_v3 }
 0x8b7   : > { %v1488_v4 = vpop.permute.xlu1 %1487 }
 0x8bf   : > { %v1994_v0 = vpop.eup %1993 }
 0x8c0   : > { %v1384_v43 = vsel %vm686_vm2, %v1994_v0, 0.0  ;;  %v1996_v44 = vpop.eup %1995 }
 0x8c1   : > { %1385 = vadd.xlane.f32.xlu0 %v1384_v43  ;;  %v1387_v45 = vsel %vm686_vm2, %v1996_v44, 0.0 }
 0x8c5   : > { %1388 = vadd.xlane.f32.xlu0 %v1387_v45 }
 0x8db   : > { %1479 = vrot.lane.b32.xlu0 %v2370_v61, %s2068_s20  ;;  %v1507_v61 = vld [vmem:[%s2506_s9 + $0x8] sm:$0xff] }
 0x94a   : > { %v1386_v46 = vpop.xlane.xlu0 %1385 }
 0x94b   : > { %1997 = vrcp.f32 %v1386_v46 }
 0x94e   : > { %v1389_v47 = vpop.xlane.xlu0 %1388 }
 0x94f   : > { %1999 = vrcp.f32 %v1389_v47 }
 0x952   : > { %v1480_v5 = vpop.permute.xlu0 %1479 }
 0x953   : > { %v1500_v6 = vsel %vm686_vm2, %v2366_v59, %v1480_v5 }
 0x954   : > { %v1502_v11 = vsel %vm583_vm1, %v1500_v6, %v1488_v4 }
 0x958   : > { %v1998_v48 = vpop.eup %1997 }
 0x959   : > { %v1392_v49 = vmul.f32 %v1998_v48, %v1994_v0 }
 0x95b   : > { %1899 = vmatprep.mubr.msk.f32.mxu0 %vm686_vm2, %v1392_v49 }
 0x95c   : > { %v2000_v50 = vpop.eup %1999 }
 0x95d   : > { %v1393_v51 = vmul.f32 %v2000_v50, %v1996_v44 }
 0x95f   : > { %1900 = vmatmul.mubr.msk.f32.vlgmr.msra.gmra.mxu0 %vm686_vm2, %v1393_v51 }
 0x960   : > { %1903 = vmatpush3.msra.mxu0 %v1513_v52 }
 0x961   : > { %1904 = vmatprep.subr.mxu0 %v1512_v54 }
 0x962   : > { %1905 = vmatpush3.msra.mxu0 %v1512_v54 }
 0x963   : > { %1906 = vmatprep.subr.mxu0 %v1511_v55 }
 0x964   : > { %1907 = vmatpush3.msra.mxu0 %v1511_v55 }
 0x965   : > { %1908 = vmatprep.subr.mxu0 %v1510_v56 }
 0x966   : > { %1909 = vmatpush3.msra.mxu0 %v1510_v56 }
 0x967   : > { %1910 = vmatprep.subr.mxu0 %v1509_v57 }
 0x968   : > { %1911 = vmatpush3.msra.mxu0 %v1509_v57 }
 0x969   : > { %1912 = vmatprep.subr.mxu0 %v1508_v58 }
 0x96a   : > { %1913 = vmatpush3.msra.mxu0 %v1508_v58 }
 0x96b   : > { %1914 = vmatprep.subr.mxu0 %v1507_v61 }
 0x96c   : > { %1915 = vmatpush3.msra.mxu0 %v1507_v61 }
 0x96d   : > { %1916 = vmatprep.subr.mxu0 %v1506_v62 }
 0x96e   : > { %1917 = vmatpush3.msra.mxu0 %v1506_v62 }
 0xa1f   : > { %v1901_v63 = vpop.f32.mrf.mxu0 }
 0xa20   : > { %1495 = vrot.lane.b32.xlu1 %v1901_v63, %s2066_s21 }
 0xa21   : > { %v1466_v1 = vpop.f32.mrf.mxu0 }
 0xa22   : > { %1493 = vrot.lane.b32.xlu0 %v1466_v1, %s2066_s21  ;;  %s361_s21 = sand.u32 1, %s2053_s14  }
 0xa23   : > { %s1686_s11 = sshll.u32 %s361_s21, 4  ;;  %s2457_s27 = scalar_lea.sflag [#allocation3], %s361_s21 }
 0xa24   : > { %s363_s25 = scalar_lea.vmem [#allocation2], %s1686_s11  ;;  %s2007_s11 = scalar_lea.vmem %s2006_s18, 512 }
 0xa25   : > { %s1611_s20 = sshll.u32 %s363_s25, 4  ;;  %s2448_s20 = int_to_ptr.vmem [resolvable:$true] %s1611_s20 }
 0xa26   : > { %s2001_s12 = scalar_lea.vmem %s2448_s20, 256  ;;  %p2008_p0 = scmp.lt.s32.totalorder %s2448_s20, %s2006_s18 }
 0xa27   : > { %p2002_p11 = scmp.ne.s32.totalorder %s2448_s20, %s2001_s12  ;;  %p2009_p1 = scmp.lt.s32.totalorder %s2007_s11, %s2001_s12 }
 0xa29   : > { %p2003_p12 = pnand %p2002_p11, %p2166_p5  ;;  %p2010_p2 = por %p2009_p1, %p2008_p0 }
 0xa2b   : > { %p2004_p13 = pneg %p2003_p12 }
 0xa2d   : > { %p2011_p3 = pnand %p2010_p2, %p2004_p13 }
 0xa92   : > { %v1496_v8 = vpop.permute.xlu1 %1495 }
 0xa93   : > { %v1505_v13 = vsel %vm1503_vm3, %v1502_v11, %v1496_v8 }
 0xa94   : > { %v1494_v10 = vpop.permute.xlu0 %1493 }
 0xa95   : > { %v1504_v12 = vsel %vm1503_vm3, %v1501_v9, %v1494_v10 }
 0xa96   : > { %1918 = vmatprep.mubr.msk.f32.mxu0 %vm382_vm0, %v1504_v12 }
 0xa97   : > { %1919 = vmatmul.mubr.msk.f32.vlgmr.msra.gmra.mxu0 %vm382_vm0, %v1505_v13 }
 0xb57   : > { %v1920_v59 = vpop.f32.mrf.mxu0 }
 0xb58   : > { %1596 = vst.msk [vmem:[%s363_s25 + $0x8] sm:$0xff] %vm382_vm0, %v1920_v59 }
 0xb59   : > { %v1586_v60 = vpop.f32.mrf.mxu0 }
 0xb5a   : > { %1595 = vst.msk [vmem:[%s363_s25] sm:$0xff] %vm382_vm0, %v1586_v60 }
 0xb5b   : > { %2014 = shalt.err (!%p2011_p3)
}
 0xb5c   : > { %s2015_s21 = scalar_lea.hbm %s2453_s30, 256  ;;  %s2019_s28 = scalar_lea.hbm %s2507_s10, 512 }
 0xb5d   : > { %p2016_p4 = scmp.ne.s32.totalorder %s2453_s30, %s2015_s21  ;;  %p2020_p9 = scmp.lt.s32.totalorder %s2453_s30, %s2507_s10 }
 0xb5e   : > { %p2021_p10 = scmp.lt.s32.totalorder %s2019_s28, %s2015_s21 }
 0xb5f   : > { %p2017_p7 = pnand %p2016_p4, %p2166_p5 }
 0xb60   : > { %p2022_p11 = por %p2021_p10, %p2020_p9 }
 0xb61   : > { %p2018_p8 = pneg %p2017_p7 }
 0xb63   : > { %p2023_p12 = pnand %p2022_p11, %p2018_p8 }
 0xb65   : > { %2026 = shalt.err (!%p2023_p12)
}
 0xb66   : > { %s2071_s12 = smov 128   ;;  %s2072_s18 = smov 8  }
 0xb67   : > { %1921 = dma.vmem_to_hbm [thread:$0]  (%p2166_p5), %s2448_s20, 256, %s2453_s30, %s2457_s27, %s2071_s12, %s2071_s12, %s2072_s18  }
 0xb68 PF: > { %p1927_p13 = scmp.ge.s32.totalorder %s2061_s16, 2  ;;  %s1626_s11 = sand.u32 1, %s2049_s13  }
 0xb69   : > { %s1627_s21 = scalar_lea.sflag [#allocation3], %s1626_s11 }
 0xb6a   : > { %p1924_p0 = pnand %p1927_p13, %p2170_p6 }
 0xb6c   : > { %p1925_p1 = pneg %p1924_p0 }
 0xb6e   : > { %2044 = dma.done.wait (%p1925_p1), %s1627_s21, 256  }
 0xb6f   : > { %2046 = vsyncadd (%p1925_p1), %s1627_s21, 4294967040  ;;  %p20_p2 = scmp.ge.s32.totalorder %s2153_s19, 4   ;;  %s2513_s13 = smov %s2053_s14 }
 0xb70   : > { %s2514_s14 = smov %s2057_s15  ;;  %s2515_s15 = smov %s2164_s22 }
 0xb71   : > { %s2516_s16 = smov %s2153_s19  ;;  %22 = sbr.rel (!%p20_p2) target bundleno = 3 (0x3), region = 98 }
 0xb76   :  { %1632 = vsyncpa [#allocation3], 1 }
 0xb77   :  { %1634 = vsyncpa [#allocation3 + $0x1], 1 }

</bundles_post_ra>
